<compile_context>
chip_gen: v6e
topology: v6e:2x2x1
jax: 0.10.0
libtpu: 0.0.40
codegen_flags: <defaults>
</compile_context>

<pallas_src>
import functools

import jax
import jax.numpy as jnp
from jax.experimental import pallas as pl
from jax.experimental.pallas import tpu as pltpu


def _gru_cell_fused_kernel(xh_ref, h_ref, w_ref, b_ref, out_ref, *, hidden_size):
    H = hidden_size

    # Single MXU pass: (B, K+H) @ (K+H, 4H) -> (B, 4H).  4H == 128 for H=32,
    # so the fused gate slab is a full, lane-dense vreg row.
    xh = xh_ref[...].astype(jnp.float32)
    g = jnp.dot(xh, w_ref[...].astype(jnp.float32),
                preferred_element_type=jnp.float32) + b_ref[...]

    a_r = g[:, 0:H]            # i_r + h_r  (bias pre-summed host-side)
    a_i = g[:, H:2 * H]        # i_i + h_i  (bias pre-summed host-side)
    i_n = g[:, 2 * H:3 * H]    # i_n
    h_n = g[:, 3 * H:4 * H]    # h_n

    resetgate = jax.nn.sigmoid(a_r)
    inputgate = jax.nn.sigmoid(a_i)
    newgate = jnp.tanh(i_n + resetgate * h_n)

    h = h_ref[...].astype(jnp.float32)
    hy = newgate + inputgate * (h - newgate)

    out_ref[...] = hy.astype(out_ref.dtype)


def prepare_gru_params(w_ih, w_hh, b_ih, b_hh, *, dtype=jnp.float32):
    """One-time parameter packing (call at parameter-load time, not per step).

    PyTorch layout in:  w_ih (3H, K), w_hh (3H, H), b_ih/b_hh (3H,).
    Out: w_fused (K+H, 4H), b_fused (1, 4H) for the fused single-matmul kernel.
    """
    GH, K = w_ih.shape
    H = w_hh.shape[1]
    assert GH == 3 * H

    w_ih_t = jnp.asarray(w_ih, jnp.float32).T          # (K, 3H)
    w_hh_t = jnp.asarray(w_hh, jnp.float32).T          # (H, 3H)

    # Top block (rows that multiply x):   [W_ih[:, :2H] | W_ih[:, 2H:] | 0]
    # Bottom block (rows that multiply h):[W_hh[:, :2H] | 0            | W_hh[:, 2H:]]
    w_top = jnp.concatenate(
        [w_ih_t[:, :2 * H], w_ih_t[:, 2 * H:], jnp.zeros((K, H), jnp.float32)], axis=1)
    w_bot = jnp.concatenate(
        [w_hh_t[:, :2 * H], jnp.zeros((H, H), jnp.float32), w_hh_t[:, 2 * H:]], axis=1)
    w_fused = jnp.concatenate([w_top, w_bot], axis=0).astype(dtype)    # (K+H, 4H)

    b_ih = jnp.asarray(b_ih, jnp.float32)
    b_hh = jnp.asarray(b_hh, jnp.float32)
    b_fused = jnp.concatenate(
        [b_ih[:2 * H] + b_hh[:2 * H], b_ih[2 * H:], b_hh[2 * H:]]).reshape(1, 4 * H)

    return w_fused, b_fused


@jax.jit
def gru_cell_pallas(x, h, w_fused, b_fused):
    """x: (B, K), h: (B, H), w_fused: (K+H, 4H), b_fused: (1, 4H) -> hy (B, H)."""
    B, _ = x.shape
    H = h.shape[1]

    # Concatenate on the contraction axis so the kernel does a single matmul.
    xh = jnp.concatenate([x.astype(w_fused.dtype), h.astype(w_fused.dtype)], axis=1)

    kernel = functools.partial(_gru_cell_fused_kernel, hidden_size=H)
    vmem = pl.BlockSpec(memory_space=pltpu.MemorySpace.VMEM)

    return pl.pallas_call(
        kernel,
        out_shape=jax.ShapeDtypeStruct((B, H), jnp.float32),
        in_specs=[vmem, vmem, vmem, vmem],   # whole arrays resident in VMEM, no grid
        out_specs=vmem,
        # Recurrent usage updates h in place: alias the h input to the output.
        input_output_aliases={1: 0},
    )(xh, h, w_fused, b_fused)


def gru_cell_ref(x, h, w_ih, w_hh, b_ih, b_hh):
    """Pure-JAX reference matching the PyTorch forward (layernorm=False)."""
    H = h.shape[1]
    gi = x @ w_ih.T + b_ih
    gh = h @ w_hh.T + b_hh
    i_r, i_i, i_n = gi[:, :H], gi[:, H:2 * H], gi[:, 2 * H:]
    h_r, h_i, h_n = gh[:, :H], gh[:, H:2 * H], gh[:, 2 * H:]
    resetgate = jax.nn.sigmoid(i_r + h_r)
    inputgate = jax.nn.sigmoid(i_i + h_i)
    newgate = jnp.tanh(i_n + resetgate * h_n)
    return newgate + inputgate * (h - newgate)


if __name__ == "__main__":
    B = 2
    input_size = 16
    hidden_size = 32
    gate_num = 3

    key = jax.random.PRNGKey(0)
    kx, kh, kwi, kwh, kbi, kbh = jax.random.split(key, 6)

    # Deterministic parameter init mirroring nn.Linear's U(-1/sqrt(fan_in), ...).
    bound_ih = 1.0 / (input_size ** 0.5)
    bound_hh = 1.0 / (hidden_size ** 0.5)
    w_ih = jax.random.uniform(kwi, (gate_num * hidden_size, input_size),
                              jnp.float32, -bound_ih, bound_ih)
    b_ih = jax.random.uniform(kbi, (gate_num * hidden_size,),
                              jnp.float32, -bound_ih, bound_ih)
    w_hh = jax.random.uniform(kwh, (gate_num * hidden_size, hidden_size),
                              jnp.float32, -bound_hh, bound_hh)
    b_hh = jax.random.uniform(kbh, (gate_num * hidden_size,),
                              jnp.float32, -bound_hh, bound_hh)

    x = jax.random.normal(kx, (B, input_size), jnp.float32)
    h = jax.random.normal(kh, (B, hidden_size), jnp.float32)

    # One-time parameter packing (parameter-load time, outside the step path).
    w_fused, b_fused = prepare_gru_params(w_ih, w_hh, b_ih, b_hh, dtype=jnp.float32)

    hy = gru_cell_pallas(x, h, w_fused, b_fused)
    hy = jax.block_until_ready(hy)

    hy_ref = gru_cell_ref(x, h, w_ih, w_hh, b_ih, b_hh)
    assert hy.shape == (B, hidden_size)
    assert jnp.allclose(hy, hy_ref, atol=1e-5, rtol=1e-5), "mismatch vs reference"

    print("KERNEL_OK")
</pallas_src>

<mosaic_0001>
module attributes {stable_mosaic.version = 11 : i64} {
  func.func @_gru_cell_fused_kernel(%arg0: memref<2x48xf32, #tpu.memory_space<vmem>>, %arg1: memref<2x32xf32, #tpu.memory_space<vmem>>, %arg2: memref<48x128xf32, #tpu.memory_space<vmem>>, %arg3: memref<1x128xf32, #tpu.memory_space<vmem>>, %arg4: memref<2x32xf32, #tpu.memory_space<vmem>>) attributes {dimension_semantics = [], scalar_prefetch = 0 : i64, scratch_operands = 0 : i64, tpu.core_type = #tpu.core_type<tc>} {
    %c0 = arith.constant 0 : index
    %c0_0 = arith.constant 0 : index
    %0 = vector.load %arg0[%c0, %c0_0] : memref<2x48xf32, #tpu.memory_space<vmem>>, vector<2x48xf32>
    %c0_1 = arith.constant 0 : index
    %c0_2 = arith.constant 0 : index
    %1 = vector.load %arg2[%c0_1, %c0_2] : memref<48x128xf32, #tpu.memory_space<vmem>>, vector<48x128xf32>
    %cst = arith.constant dense<0.000000e+00> : vector<2x128xf32>
    %2 = tpu.matmul %0, %1, %cst {dimension_numbers = #tpu.dot_dimension_numbers<[1], [0], [0], [1], [0, 0, 1, 1], [], []>} : vector<2x48xf32>, vector<48x128xf32>, vector<2x128xf32> -> vector<2x128xf32>
    %c0_3 = arith.constant 0 : index
    %c0_4 = arith.constant 0 : index
    %3 = vector.load %arg3[%c0_3, %c0_4] : memref<1x128xf32, #tpu.memory_space<vmem>>, vector<1x128xf32>
    %4 = vector.broadcast %3 : vector<1x128xf32> to vector<2x128xf32>
    %5 = arith.addf %2, %4 : vector<2x128xf32>
    %6 = vector.extract_strided_slice %5 {offsets = [0, 0], sizes = [2, 32], strides = [1, 1]} : vector<2x128xf32> to vector<2x32xf32>
    %7 = vector.extract_strided_slice %5 {offsets = [0, 32], sizes = [2, 32], strides = [1, 1]} : vector<2x128xf32> to vector<2x32xf32>
    %8 = vector.extract_strided_slice %5 {offsets = [0, 64], sizes = [2, 32], strides = [1, 1]} : vector<2x128xf32> to vector<2x32xf32>
    %9 = vector.extract_strided_slice %5 {offsets = [0, 96], sizes = [2, 32], strides = [1, 1]} : vector<2x128xf32> to vector<2x32xf32>
    %10 = arith.negf %6 : vector<2x32xf32>
    %11 = math.exp %10 : vector<2x32xf32>
    %cst_5 = arith.constant 1.000000e+00 : f32
    %12 = vector.broadcast %cst_5 : f32 to vector<2x32xf32>
    %13 = arith.addf %12, %11 : vector<2x32xf32>
    %14 = arith.divf %12, %13 : vector<2x32xf32>
    %15 = arith.negf %7 : vector<2x32xf32>
    %16 = math.exp %15 : vector<2x32xf32>
    %cst_6 = arith.constant 1.000000e+00 : f32
    %17 = vector.broadcast %cst_6 : f32 to vector<2x32xf32>
    %18 = arith.addf %17, %16 : vector<2x32xf32>
    %19 = arith.divf %17, %18 : vector<2x32xf32>
    %20 = arith.mulf %14, %9 : vector<2x32xf32>
    %21 = arith.addf %8, %20 : vector<2x32xf32>
    %22 = math.tanh %21 : vector<2x32xf32>
    %c0_7 = arith.constant 0 : index
    %c0_8 = arith.constant 0 : index
    %23 = vector.load %arg1[%c0_7, %c0_8] : memref<2x32xf32, #tpu.memory_space<vmem>>, vector<2x32xf32>
    %24 = arith.subf %23, %22 : vector<2x32xf32>
    %25 = arith.mulf %19, %24 : vector<2x32xf32>
    %26 = arith.addf %22, %25 : vector<2x32xf32>
    %c0_9 = arith.constant 0 : index
    %c0_10 = arith.constant 0 : index
    %27 = vector.load %arg4[%c0_9, %c0_10] : memref<2x32xf32, #tpu.memory_space<vmem>>, vector<2x32xf32>
    tpu.vector_store %arg4[%c0_9, %c0_10], %26 {strides = array<i32>} : memref<2x32xf32, #tpu.memory_space<vmem>>, vector<2x32xf32>,
    return
  }
}

</mosaic_0001>

<bundles_post_ra>
// kernel: gru_cell_pallas.1
= control target key start
LH: loop header
LB: loop body
LE: loop exit
PB: predicated region body
PF: predicated region fallthrough
CT: control target
= control target key end

     0   :  { %9 = vsyncpa [#allocation3], 0  ;;  %s342_s0 = inlined_call_operand.vmem [shape: f32[2,48], index: 0, kind: input, shape index: {}]   ;;  %s343_s1 = inlined_call_operand.hbm [shape: f32[2,32], index: 1, kind: input, shape index: {}, may-alias: {1,4}]   ;;  %s344_s2 = inlined_call_operand.hbm [shape: f32[48,128], index: 2, kind: input, shape index: {}]   ;;  %s345_s3 = inlined_call_operand.vmem [shape: f32[1,128], index: 3, kind: input, shape index: {}]   ;;  %s346_s4 = inlined_call_operand.hbm [shape: f32[2,32], index: 4, kind: output, shape index: {}, may-alias: {1,4}]  }
   0x1   :  { %10 = vsyncpa [#allocation6], 0 }
   0x2   :  { %11 = vsyncpa [#allocation4], 0  ;;  %s293_s15 = smov [#allocation2]   ;;  %s294_s17 = smov [#allocation5]  }
   0x3   :  { %s20_s16 = sshll.u32 %s293_s15, 4  ;;  %s29_s18 = sshll.u32 %s294_s17, 4  ;;  %s21_s16 = int_to_ptr.vmem [resolvable:$true] %s20_s16  ;;  %s30_s18 = int_to_ptr.vmem [resolvable:$true] %s29_s18 }
   0x4   :  { %s235_s19 = scalar_lea.vmem %s21_s16, 32  ;;  %p240_p1 = scmp.lt.s32.totalorder %s21_s16, %s21_s16 }
   0x5   :  { %p236_p0 = scmp.ne.s32.totalorder %s21_s16, %s235_s19  ;;  %p241_p2 = scmp.lt.s32.totalorder %s235_s19, %s235_s19 }
   0x7   :  { %p242_p3 = por %p241_p2, %p240_p1 }
   0x9   :  { %p243_p4 = pnand %p242_p3, %p236_p0 }
   0xb   :  { %246 = shalt.err (!%p243_p4)
}
   0xc   :  { %23 = dma.hbm_to_vmem [thread:$0]  %s343_s1, 32, %s21_s16, [#allocation3]  }
   0xd   :  { %s255_s22 = scalar_lea.vmem %s30_s18, 768  ;;  %p260_p6 = scmp.lt.s32.totalorder %s30_s18, %s30_s18 }
   0xe   :  { %p256_p5 = scmp.ne.s32.totalorder %s30_s18, %s255_s22  ;;  %p261_p7 = scmp.lt.s32.totalorder %s255_s22, %s255_s22 }
  0x10   :  { %p262_p8 = por %p261_p7, %p260_p6 }
  0x12   :  { %p263_p9 = pnand %p262_p8, %p256_p5 }
  0x14   :  { %266 = shalt.err (!%p263_p9)
}
  0x15   :  { %s295_s23 = smov 128   ;;  %s296_s24 = smov 8  }
  0x16   :  { %35 = dma.hbm_to_vmem [thread:$0]  %s344_s2, 768, %s30_s18, [#allocation6], %s295_s23, %s295_s23, %s296_s24  }
  0x17   :  { %287 = dma.done.wait [#allocation3], 32  }
  0x18   :  { %288 = vsyncadd [#allocation3], 4294967264 }
  0x19   :  { %289 = dma.done.wait [#allocation6], 768  }
  0x1a   :  { %290 = vsyncadd [#allocation6], 4294966528  ;;  %v297_v0 = vmov 0.0   ;;  %vm298_vm0 = vmmov 0   ;;  %v50_v1 = vld [vmem:[#allocation5 + $0x28] sm:$0xff]  ;;  %v49_v2 = vld [vmem:[#allocation5 + $0x20] sm:$0xff] }
  0x1b   :  { %197 = vmatprep.subr.mxu0 %v297_v0  ;;  %209 = vmatprep.mubr.msk.f32.mxu0 %vm298_vm0, %v297_v0  ;;  %v48_v3 = vld [vmem:[#allocation5 + $0x18] sm:$0xff]  ;;  %v47_v4 = vld [vmem:[#allocation5 + $0x10] sm:$0xff]  ;;  %v46_v5 = vld [vmem:[#allocation5 + $0x8] sm:$0xff]  ;;  %vm58_vm1 = vcmask 392192   ;;  %s299_s29 = smov 32   ;;  %vm169_vm2 = vcmask 254976  }
  0x1c   :  { %198 = vmatpush3.msra.mxu0 %v50_v1  ;;  %v45_v6 = vld [vmem:[#allocation5] sm:$0xff]  ;;  %v44_v7 = vld [vmem:[%s342_s0] sm:$0x3]  ;;  %s300_s0 = smov 64  }
  0x1d   :  { %199 = vmatprep.subr.mxu0 %v297_v0  ;;  %v187_v8 = vld [vmem:[%s345_s3] ss:$0 sm:$0xff]  ;;  %s301_s3 = smov [#allocation7]  }
  0x1e   :  { %200 = vmatpush3.msra.mxu0 %v49_v2  ;;  %v149_v21 = vld [vmem:[#allocation2] sm:$0x3]  ;;  %s177_s30 = sshll.u32 %s301_s3, 4  ;;  %s178_s30 = int_to_ptr.vmem [resolvable:$true] %s177_s30 }
  0x1f   :  { %201 = vmatprep.subr.mxu0 %v297_v0  ;;  %s267_s5 = scalar_lea.vmem %s178_s30, 32  ;;  %p272_p11 = scmp.lt.s32.totalorder %s178_s30, %s178_s30 }
  0x20   :  { %202 = vmatpush3.msra.mxu0 %v48_v3  ;;  %p268_p10 = scmp.ne.s32.totalorder %s178_s30, %s267_s5  ;;  %p273_p12 = scmp.lt.s32.totalorder %s267_s5, %s267_s5 }
  0x21   :  { %203 = vmatprep.subr.mxu0 %v297_v0 }
  0x22   :  { %204 = vmatpush3.msra.mxu0 %v47_v4  ;;  %p274_p13 = por %p273_p12, %p272_p11 }
  0x23   :  { %205 = vmatprep.subr.mxu0 %v297_v0 }
  0x24   :  { %206 = vmatpush3.msra.mxu0 %v46_v5  ;;  %p275_p0 = pnand %p274_p13, %p268_p10 }
  0x25   :  { %207 = vmatprep.subr.mxu0 %v297_v0 }
  0x26   :  { %208 = vmatpush3.msra.mxu0 %v45_v6 }
  0x27   :  { %210 = vmatmul.mubr.msk.f32.vlgmr.msra.gmra.mxu0 %vm58_vm1, %v44_v7 }
  0xe7   :  { %v128_v9 = vpop.f32.mrf.mxu0 }
  0xe8   :  { %v129_v10 = vadd.f32 %v187_v8, %v128_v9 }
  0xe9   :  { %v211_v11 = vpop.f32.mrf.mxu0 }
  0xea   :  { %139 = vrot.lane.b32.xlu0 %v129_v10, %s299_s29  ;;  %v189_v12 = vmul.f32 -1.442695, %v129_v10 }
  0xec   :  { %221 = vpow2.f32 %v189_v12 }
  0xf9   :  { %v222_v13 = vpop.eup %221 }
  0xfa   :  { %v135_v14 = vadd.f32 1.0, %v222_v13 }
  0xfc   :  { %223 = vrcp.f32 %v135_v14 }
 0x109   :  { %v224_v15 = vpop.eup %223 }
 0x15c   :  { %v140_v16 = vpop.permute.xlu0 %139 }
 0x15d   :  { %v142_v17 = vmul.f32 %v224_v15, %v140_v16 }
 0x15f   :  { %144 = vrot.lane.b32.xlu0 %v142_v17, %s300_s0 }
 0x1d1   :  { %v145_v18 = vpop.permute.xlu0 %144 }
 0x1d2   :  { %v147_v19 = vadd.f32 %v145_v18, %v129_v10 }
 0x1d4   :  { %225 = vtanh.f32 %v147_v19 }
 0x1e1   :  { %v226_v20 = vpop.eup %225 }
 0x1e2   :  { %151 = vrot.lane.b32.xlu1 %v226_v20, %s300_s0 }
 0x254   :  { %v152_v22 = vpop.permute.xlu1 %151 }
 0x255   :  { %v154_v23 = vsub.f32 %v149_v21, %v152_v22 }
 0x257   :  { %156 = vrot.lane.b32.xlu1 %v154_v23, %s299_s29 }
 0x2c9   :  { %v157_v24 = vpop.permute.xlu1 %156 }
 0x2ca   :  { %v159_v25 = vmul.f32 %v224_v15, %v157_v24 }
 0x2cc   :  { %161 = vrot.lane.b32.xlu0 %v159_v25, %s299_s29 }
 0x33e   :  { %v162_v26 = vpop.permute.xlu0 %161 }
 0x33f   :  { %v164_v27 = vadd.f32 %v226_v20, %v162_v26 }
 0x341   :  { %166 = vrot.lane.b32.xlu1 %v164_v27, %s300_s0 }
 0x3b3   :  { %v167_v28 = vpop.permute.xlu1 %166 }
 0x3b4   :  { %170 = vst.msk [vmem:[#allocation7] sm:$0x3] %vm169_vm2, %v167_v28 }
 0x3b5   :  { %278 = shalt.err (!%p275_p0)
}
 0x3b6   :  { %180 = dma.vmem_to_hbm [thread:$0]  %s178_s30, 32, %s346_s4, [#allocation4]  }
 0x3b7   :  { %291 = dma.done.wait [#allocation4], 32  }
 0x3b8   :  { %292 = vsyncadd [#allocation4], 4294967264 }
 0x3b9   :  { %184 = vsyncpa [#allocation3], 1 }
 0x3ba   :  { %185 = vsyncpa [#allocation6], 1 }
 0x3bb   :  { %186 = vsyncpa [#allocation4], 1 }

</bundles_post_ra>
